<compile_context>
chip_gen: v5e
topology: v5e:2x2
jax: 0.10.0
libtpu: 0.0.40
codegen_flags: <defaults>
</compile_context>

<pallas_src>
from functools import partial

import jax
import jax.numpy as jnp
from jax import lax
from jax.experimental import pallas as pl
from jax.experimental.pallas import tpu as pltpu


# dot_general dimension numbers for A @ B^T (contract last dim of both operands).
_TRANS_B_DIMS = (((1,), (1,)), ((), ()))


def _reward_mlp_kernel(x_ref,
                       w1t_ref, b1_ref,
                       w2t_ref, b2_ref,
                       w3t_ref, b3_ref,
                       w4t_ref, b4_ref,
                       o_ref):
    """Feature-major fused MLP: activations are (h, tile_b), batch on lanes."""
    wdt = w1t_ref.dtype  # compute dtype of weights / matmul inputs (bf16 or f32)

    # Layer 1: (h1, sa) x (tile_b, sa)^T -> (h1, tile_b).  BN(h1) folded into
    # layer 2; dropout is identity in eval mode.  Accumulate in f32.
    h = lax.dot_general(w1t_ref[...], x_ref[...], _TRANS_B_DIMS,
                        preferred_element_type=jnp.float32)
    h = jnp.maximum(h + b1_ref[...], 0.0)

    # Layer 2: (h2, h1) @ (h1, tile_b) -> (h2, tile_b).  BN(h2) folded into layer 3.
    h = jnp.dot(w2t_ref[...], h.astype(wdt), preferred_element_type=jnp.float32)
    h = jnp.maximum(h + b2_ref[...], 0.0)

    # Layer 3: (h3, h2) @ (h2, tile_b) -> (h3, tile_b).  BN(h3) folded into head.
    h = jnp.dot(w3t_ref[...], h.astype(wdt), preferred_element_type=jnp.float32)
    h = jnp.maximum(h + b3_ref[...], 0.0)

    # Head: (1, h3) @ (h3, tile_b) -> (1, tile_b): lane-dense row of rewards,
    # stored with a single unmasked vst per vreg row.
    r = jnp.dot(w4t_ref[...], h.astype(wdt), preferred_element_type=jnp.float32)
    o_ref[...] = r + b4_ref[...]


def fold_bn_params(params):
    """Fold eval-mode BatchNorm affine of layer i into layer i+1 (exact).

    (relu_out * s + t) @ W + b  ==  relu_out @ (s^T * W) + (t @ W + b).
    """
    (w1, b1, s1, t1, w2, b2, s2, t2, w3, b3, s3, t3, w4, b4) = params
    w2f = s1.reshape(-1, 1) * w2
    b2f = t1 @ w2 + b2
    w3f = s2.reshape(-1, 1) * w3
    b3f = t2 @ w3 + b3
    w4f = s3.reshape(-1, 1) * w4          # (h3, 1)
    b4f = t3 @ w4 + b4                    # (1, 1)
    return (w1, b1, w2f, b2f, w3f, b3f, w4f, b4f)


def prepare_kernel_params(params, compute_dtype=jnp.bfloat16):
    """One-time host-side prep: BN fold + transpose to (h_out, h_in) + cast.

    Weights go to `compute_dtype` (bf16 by default: halves HBM/VMEM traffic and
    hits the native bf16 MXU path); biases stay f32 as (h, 1) columns since the
    bias-add happens on the f32 accumulator.  Done once offline, not per call.
    """
    (w1, b1, w2f, b2f, w3f, b3f, w4f, b4f) = fold_bn_params(params)
    return (
        w1.T.astype(compute_dtype),  b1.T.astype(jnp.float32),    # (h1, sa), (h1, 1)
        w2f.T.astype(compute_dtype), b2f.T.astype(jnp.float32),   # (h2, h1), (h2, 1)
        w3f.T.astype(compute_dtype), b3f.T.astype(jnp.float32),   # (h3, h2), (h3, 1)
        w4f.T.astype(compute_dtype), b4f.astype(jnp.float32),     # (1, h3),  (1, 1)
    )


def _choose_tile_b(B, max_tile=2048):
    """Large lane-aligned batch tiles; >= 2 grid steps so v7x uses both TCs."""
    if B <= 128 or B % 128 != 0:
        return B                          # single (possibly lane-masked) step
    tile = min(max_tile, B // 2)          # at least 2 steps
    tile = max(128, (tile // 128) * 128)  # lane-dense output slabs
    while B % tile != 0:
        tile -= 128
    return tile


@partial(jax.jit, static_argnames=("tile_b",))
def reward_model_reg_forward(x, kparams, *, tile_b=None):
    """x: (B, sa_size) f32.  kparams from prepare_kernel_params.

    Returns (B, 1) f32  (mode=None, normalise=False path of the module).
    """
    (w1t, b1c, w2t, b2c, w3t, b3c, w4t, b4f) = kparams
    B, sa = x.shape
    h1 = w1t.shape[0]
    h2 = w2t.shape[0]
    h3 = w3t.shape[0]

    if tile_b is None:
        tile_b = _choose_tile_b(B)
    assert B % tile_b == 0, "batch must be divisible by tile_b"
    assert tile_b % 8 == 0, "tile_b must be sublane-aligned (multiple of 8)"
    assert tile_b == B or tile_b % 128 == 0, "lane-dense tiles need tile_b % 128 == 0"
    grid = (B // tile_b,)

    # Only large HBM stream is x: cast it to the weights' compute dtype (bf16).
    x_c = x.astype(w1t.dtype)

    def const(shape):
        # Full-array block with a constant index_map: fetched once, VMEM-resident
        # across all grid steps.
        return pl.BlockSpec(shape, lambda i: tuple(0 for _ in shape))

    flops = 2 * B * (sa * h1 + h1 * h2 + h2 * h3 + h3)
    bytes_accessed = (
        x_c.size * x_c.dtype.itemsize
        + sum(p.size * p.dtype.itemsize for p in kparams)
        + B * 4  # (1, B) f32 output
    )

    out_t = pl.pallas_call(
        _reward_mlp_kernel,
        out_shape=jax.ShapeDtypeStruct((1, B), jnp.float32),
        grid_spec=pltpu.PrefetchScalarGridSpec(
            num_scalar_prefetch=0,
            grid=grid,
            in_specs=[
                pl.BlockSpec((tile_b, sa), lambda i: (i, 0)),   # x tile (batch-tiled)
                const((h1, sa)), const((h1, 1)),
                const((h2, h1)), const((h2, 1)),
                const((h3, h2)), const((h3, 1)),
                const((1, h3)), const((1, 1)),
            ],
            out_specs=pl.BlockSpec((1, tile_b), lambda i: (0, i)),  # lane-dense slab
        ),
        compiler_params=pltpu.CompilerParams(
            dimension_semantics=("parallel",),        # shards steps across v7x TCs
            vmem_limit_bytes=32 * 1024 * 1024,        # explicit; tiny actual usage,
        ),                                            # safe on v7x's 64 MiB VMEM
        cost_estimate=pl.CostEstimate(
            flops=flops, transcendentals=0, bytes_accessed=bytes_accessed),
    )(x_c, w1t, b1c, w2t, b2c, w3t, b3c, w4t, b4f)

    # (1, B) -> (B, 1): pure row-major reinterpretation; fuses away under jit.
    return out_t.reshape(B, 1)


def init_params(key, sa_size, h1, h2, h3):
    """Deterministic synthetic parameters (PyTorch-like uniform Linear init).

    BatchNorm1d defaults: gamma=1, beta=0, running_mean=0, running_var=1, eps=1e-5,
    expressed as per-feature scale/shift: y = x * scale + shift.
    """
    keys = jax.random.split(key, 8)

    def linear(kw, kb, fan_in, fan_out):
        bound = 1.0 / jnp.sqrt(float(fan_in))
        w = jax.random.uniform(kw, (fan_in, fan_out), jnp.float32, -bound, bound)
        b = jax.random.uniform(kb, (1, fan_out), jnp.float32, -bound, bound)
        return w, b

    def bn_fold(n, eps=1e-5):
        gamma = jnp.ones((1, n), jnp.float32)
        beta = jnp.zeros((1, n), jnp.float32)
        running_mean = jnp.zeros((1, n), jnp.float32)
        running_var = jnp.ones((1, n), jnp.float32)
        scale = gamma / jnp.sqrt(running_var + eps)
        shift = beta - running_mean * scale
        return scale, shift

    w1, b1 = linear(keys[0], keys[1], sa_size, h1)
    w2, b2 = linear(keys[2], keys[3], h1, h2)
    w3, b3 = linear(keys[4], keys[5], h2, h3)
    w4, b4 = linear(keys[6], keys[7], h3, 1)
    s1, t1 = bn_fold(h1)
    s2, t2 = bn_fold(h2)
    s3, t3 = bn_fold(h3)
    return (w1, b1, s1, t1, w2, b2, s2, t2, w3, b3, s3, t3, w4, b4)


def reference_forward(x, params):
    """Pure-JAX f32 reference of the un-folded eval-mode forward."""
    (w1, b1, s1, t1, w2, b2, s2, t2, w3, b3, s3, t3, w4, b4) = params
    h = jnp.maximum(x @ w1 + b1, 0.0) * s1 + t1
    h = jnp.maximum(h @ w2 + b2, 0.0) * s2 + t2
    h = jnp.maximum(h @ w3 + b3, 0.0) * s3 + t3
    return h @ w4 + b4


if __name__ == "__main__":
    # Sizes: state_size=20, action_size=12 -> sa_size=32; h1=64, h2=64, h3=32.
    state_size, action_size = 20, 12
    sa_size = state_size + action_size
    h1, h2, h3 = 64, 64, 32
    B = 256  # splits into two lane-dense grid steps (exercises multi-step path)

    key = jax.random.PRNGKey(0)
    kx, kp = jax.random.split(key)
    x = jax.random.normal(kx, (B, sa_size), jnp.float32)
    params = init_params(kp, sa_size, h1, h2, h3)

    # x.view(-1, sa_size) equivalent (already flat here, kept explicit as glue):
    x_flat = x.reshape(-1, sa_size)

    ref = reference_forward(x_flat, params)

    # 1) f32 compute path: checks the BN fold / transposed layout exactly.
    kparams_f32 = prepare_kernel_params(params, compute_dtype=jnp.float32)
    out_f32 = jax.block_until_ready(reward_model_reg_forward(x_flat, kparams_f32))
    assert out_f32.shape == (B, 1)
    assert jnp.allclose(out_f32, ref, atol=1e-4, rtol=1e-4), "f32 mismatch vs reference"

    # 2) bf16 fast path (default): bf16 x/weights, f32 accumulation -> looser tol.
    kparams = prepare_kernel_params(params)
    out = jax.block_until_ready(reward_model_reg_forward(x_flat, kparams))
    assert out.shape == (B, 1)
    assert jnp.allclose(out, ref, atol=5e-2, rtol=5e-2), "bf16 mismatch vs reference"

    print("KERNEL_OK")
</pallas_src>

<mosaic_0001>
module attributes {stable_mosaic.version = 11 : i64} {
  func.func @_reward_mlp_kernel(%arg0: i32, %arg1: memref<128x32xf32, #tpu.memory_space<vmem>>, %arg2: memref<64x32xf32, #tpu.memory_space<vmem>>, %arg3: memref<64x1xf32, #tpu.memory_space<vmem>>, %arg4: memref<64x64xf32, #tpu.memory_space<vmem>>, %arg5: memref<64x1xf32, #tpu.memory_space<vmem>>, %arg6: memref<32x64xf32, #tpu.memory_space<vmem>>, %arg7: memref<32x1xf32, #tpu.memory_space<vmem>>, %arg8: memref<1x32xf32, #tpu.memory_space<vmem>>, %arg9: memref<1x1xf32, #tpu.memory_space<vmem>>, %arg10: memref<1x128xf32, #tpu.memory_space<vmem>>) attributes {dimension_semantics = [#tpu.dimension_semantics<parallel>], iteration_bounds = array<i64: 2>, scalar_prefetch = 0 : i64, scratch_operands = 0 : i64, tpu.core_type = #tpu.core_type<tc>, window_params = [{transform_indices = @transform_0, window_bounds = array<i64: 128, 32>}, {pipeline_mode = #tpu.pipeline_mode<synchronous>, transform_indices = @transform_1, window_bounds = array<i64: 64, 32>}, {pipeline_mode = #tpu.pipeline_mode<synchronous>, transform_indices = @transform_2, window_bounds = array<i64: 64, 1>}, {pipeline_mode = #tpu.pipeline_mode<synchronous>, transform_indices = @transform_3, window_bounds = array<i64: 64, 64>}, {pipeline_mode = #tpu.pipeline_mode<synchronous>, transform_indices = @transform_4, window_bounds = array<i64: 64, 1>}, {pipeline_mode = #tpu.pipeline_mode<synchronous>, transform_indices = @transform_5, window_bounds = array<i64: 32, 64>}, {pipeline_mode = #tpu.pipeline_mode<synchronous>, transform_indices = @transform_6, window_bounds = array<i64: 32, 1>}, {pipeline_mode = #tpu.pipeline_mode<synchronous>, transform_indices = @transform_7, window_bounds = array<i64: 1, 32>}, {pipeline_mode = #tpu.pipeline_mode<synchronous>, transform_indices = @transform_8, window_bounds = array<i64: 1, 1>}, {transform_indices = @transform_9, window_bounds = array<i64: 1, 128>}]} {
    %c0 = arith.constant 0 : index
    %c0_0 = arith.constant 0 : index
    %0 = vector.load %arg2[%c0, %c0_0] : memref<64x32xf32, #tpu.memory_space<vmem>>, vector<64x32xf32>
    %c0_1 = arith.constant 0 : index
    %c0_2 = arith.constant 0 : index
    %1 = vector.load %arg1[%c0_1, %c0_2] : memref<128x32xf32, #tpu.memory_space<vmem>>, vector<128x32xf32>
    %cst = arith.constant dense<0.000000e+00> : vector<64x128xf32>
    %2 = tpu.matmul %0, %1, %cst {dimension_numbers = #tpu.dot_dimension_numbers<[1], [1], [0], [0], [0, 0, 1, 0], [], []>} : vector<64x32xf32>, vector<128x32xf32>, vector<64x128xf32> -> vector<64x128xf32>
    %c0_3 = arith.constant 0 : index
    %c0_4 = arith.constant 0 : index
    %3 = vector.load %arg3[%c0_3, %c0_4] : memref<64x1xf32, #tpu.memory_space<vmem>>, vector<64x1xf32>
    %4 = vector.broadcast %3 : vector<64x1xf32> to vector<64x128xf32>
    %5 = arith.addf %2, %4 : vector<64x128xf32>
    %cst_5 = arith.constant 0.000000e+00 : f32
    %6 = vector.broadcast %cst_5 : f32 to vector<64x128xf32>
    %7 = arith.maximumf %5, %6 : vector<64x128xf32>
    %c0_6 = arith.constant 0 : index
    %c0_7 = arith.constant 0 : index
    %8 = vector.load %arg4[%c0_6, %c0_7] : memref<64x64xf32, #tpu.memory_space<vmem>>, vector<64x64xf32>
    %cst_8 = arith.constant dense<0.000000e+00> : vector<64x128xf32>
    %9 = tpu.matmul %8, %7, %cst_8 {dimension_numbers = #tpu.dot_dimension_numbers<[1], [0], [0], [1], [0, 0, 1, 1], [], []>} : vector<64x64xf32>, vector<64x128xf32>, vector<64x128xf32> -> vector<64x128xf32>
    %c0_9 = arith.constant 0 : index
    %c0_10 = arith.constant 0 : index
    %10 = vector.load %arg5[%c0_9, %c0_10] : memref<64x1xf32, #tpu.memory_space<vmem>>, vector<64x1xf32>
    %11 = vector.broadcast %10 : vector<64x1xf32> to vector<64x128xf32>
    %12 = arith.addf %9, %11 : vector<64x128xf32>
    %cst_11 = arith.constant 0.000000e+00 : f32
    %13 = vector.broadcast %cst_11 : f32 to vector<64x128xf32>
    %14 = arith.maximumf %12, %13 : vector<64x128xf32>
    %c0_12 = arith.constant 0 : index
    %c0_13 = arith.constant 0 : index
    %15 = vector.load %arg6[%c0_12, %c0_13] : memref<32x64xf32, #tpu.memory_space<vmem>>, vector<32x64xf32>
    %cst_14 = arith.constant dense<0.000000e+00> : vector<32x128xf32>
    %16 = tpu.matmul %15, %14, %cst_14 {dimension_numbers = #tpu.dot_dimension_numbers<[1], [0], [0], [1], [0, 0, 1, 1], [], []>} : vector<32x64xf32>, vector<64x128xf32>, vector<32x128xf32> -> vector<32x128xf32>
    %c0_15 = arith.constant 0 : index
    %c0_16 = arith.constant 0 : index
    %17 = vector.load %arg7[%c0_15, %c0_16] : memref<32x1xf32, #tpu.memory_space<vmem>>, vector<32x1xf32>
    %18 = vector.broadcast %17 : vector<32x1xf32> to vector<32x128xf32>
    %19 = arith.addf %16, %18 : vector<32x128xf32>
    %cst_17 = arith.constant 0.000000e+00 : f32
    %20 = vector.broadcast %cst_17 : f32 to vector<32x128xf32>
    %21 = arith.maximumf %19, %20 : vector<32x128xf32>
    %c0_18 = arith.constant 0 : index
    %c0_19 = arith.constant 0 : index
    %22 = vector.load %arg8[%c0_18, %c0_19] : memref<1x32xf32, #tpu.memory_space<vmem>>, vector<1x32xf32>
    %cst_20 = arith.constant dense<0.000000e+00> : vector<1x128xf32>
    %23 = tpu.matmul %22, %21, %cst_20 {dimension_numbers = #tpu.dot_dimension_numbers<[1], [0], [0], [1], [0, 0, 1, 1], [], []>} : vector<1x32xf32>, vector<32x128xf32>, vector<1x128xf32> -> vector<1x128xf32>
    %c0_21 = arith.constant 0 : index
    %c0_22 = arith.constant 0 : index
    %24 = vector.load %arg9[%c0_21, %c0_22] : memref<1x1xf32, #tpu.memory_space<vmem>>, vector<1x1xf32>
    %25 = vector.broadcast %24 : vector<1x1xf32> to vector<1x128xf32>
    %26 = arith.addf %23, %25 : vector<1x128xf32>
    %c0_23 = arith.constant 0 : index
    %c0_24 = arith.constant 0 : index
    %27 = vector.load %arg10[%c0_23, %c0_24] : memref<1x128xf32, #tpu.memory_space<vmem>>, vector<1x128xf32>
    tpu.vector_store %arg10[%c0_23, %c0_24], %26 {strides = array<i32>} : memref<1x128xf32, #tpu.memory_space<vmem>>, vector<1x128xf32>,
    return
  }
  func.func @transform_0(%arg0: i32) -> (i32, i32) {
    %c0_i32 = arith.constant 0 : i32
    %c0_i32_0 = arith.constant 0 : i32
    return %arg0, %c0_i32 : i32, i32
  }
  func.func @transform_1(%arg0: i32) -> (i32, i32) {
    %c0_i32 = arith.constant 0 : i32
    %c0_i32_0 = arith.constant 0 : i32
    %c0_i32_1 = arith.constant 0 : i32
    return %c0_i32, %c0_i32_0 : i32, i32
  }
  func.func @transform_2(%arg0: i32) -> (i32, i32) {
    %c0_i32 = arith.constant 0 : i32
    %c0_i32_0 = arith.constant 0 : i32
    %c0_i32_1 = arith.constant 0 : i32
    return %c0_i32, %c0_i32_0 : i32, i32
  }
  func.func @transform_3(%arg0: i32) -> (i32, i32) {
    %c0_i32 = arith.constant 0 : i32
    %c0_i32_0 = arith.constant 0 : i32
    %c0_i32_1 = arith.constant 0 : i32
    return %c0_i32, %c0_i32_0 : i32, i32
  }
  func.func @transform_4(%arg0: i32) -> (i32, i32) {
    %c0_i32 = arith.constant 0 : i32
    %c0_i32_0 = arith.constant 0 : i32
    %c0_i32_1 = arith.constant 0 : i32
    return %c0_i32, %c0_i32_0 : i32, i32
  }
  func.func @transform_5(%arg0: i32) -> (i32, i32) {
    %c0_i32 = arith.constant 0 : i32
    %c0_i32_0 = arith.constant 0 : i32
    %c0_i32_1 = arith.constant 0 : i32
    return %c0_i32, %c0_i32_0 : i32, i32
  }
  func.func @transform_6(%arg0: i32) -> (i32, i32) {
    %c0_i32 = arith.constant 0 : i32
    %c0_i32_0 = arith.constant 0 : i32
    %c0_i32_1 = arith.constant 0 : i32
    return %c0_i32, %c0_i32_0 : i32, i32
  }
  func.func @transform_7(%arg0: i32) -> (i32, i32) {
    %c0_i32 = arith.constant 0 : i32
    %c0_i32_0 = arith.constant 0 : i32
    %c0_i32_1 = arith.constant 0 : i32
    return %c0_i32, %c0_i32_0 : i32, i32
  }
  func.func @transform_8(%arg0: i32) -> (i32, i32) {
    %c0_i32 = arith.constant 0 : i32
    %c0_i32_0 = arith.constant 0 : i32
    %c0_i32_1 = arith.constant 0 : i32
    return %c0_i32, %c0_i32_0 : i32, i32
  }
  func.func @transform_9(%arg0: i32) -> (i32, i32) {
    %c0_i32 = arith.constant 0 : i32
    %c0_i32_0 = arith.constant 0 : i32
    return %c0_i32, %arg0 : i32, i32
  }
}

</mosaic_0001>

<bundles_post_ra>
// kernel: reward_model_reg_forward.1
= control target key start
LH: loop header
LB: loop body
LE: loop exit
PB: predicated region body
PF: predicated region fallthrough
CT: control target
= control target key end

     0   :  { %s1331_s0 = inlined_call_operand.vmem [shape: f32[256,32], index: 0, kind: input, shape index: {}]   ;;  %s1332_s1 = inlined_call_operand.vmem [shape: f32[64,32], index: 1, kind: input, shape index: {}]   ;;  %s1333_s2 = inlined_call_operand.vmem [shape: f32[64,1], index: 2, kind: input, shape index: {}]   ;;  %s1334_s3 = inlined_call_operand.vmem [shape: f32[64,64], index: 3, kind: input, shape index: {}]   ;;  %s1335_s4 = inlined_call_operand.vmem [shape: f32[64,1], index: 4, kind: input, shape index: {}]   ;;  %s1336_s5 = inlined_call_operand.vmem [shape: f32[32,64], index: 5, kind: input, shape index: {}]   ;;  %s1337_s6 = inlined_call_operand.vmem [shape: f32[32,1], index: 6, kind: input, shape index: {}]   ;;  %s1338_s7 = inlined_call_operand.vmem [shape: f32[1,32], index: 7, kind: input, shape index: {}]   ;;  %s1339_s8 = inlined_call_operand.<no memory space> [shape: f32[1,1], index: 8, kind: input, shape index: {}]   ;;  %s1340_s9 = inlined_call_operand.hbm [shape: f32[1,256], index: 9, kind: output, shape index: {}]  }
   0x1   :  { %v14_v0 = vstv %s1339_s8 }
   0x2   :  { %15 = vst [vmem:[#allocation2] sm:$0x1] %v14_v0 }
   0x3   :  { %16 = vsyncpa [#allocation4], 0 }
   0x4   :  { %18 = vsyncpa [#allocation4 + $0x1], 0  ;;  %s1053_s11 = smov 0   ;;  %s1055_s12 = smov 0  }
   0x5   :  { %s1057_s13 = smov 0   ;;  %s1059_s14 = smov 0  }
   0x6 LB: > { %s1074_s8 = sadd.s32 4294967295, %s997_s14   ;;  %s831_s15 = sadd.s32 4294967294, %s997_s14   ;;  %s997_s14 = sphi %s1059_s14, %s1346_s14   ;;  %s993_s13 = sphi %s1057_s13, %s1345_s13   ;;  %s989_s12 = sphi %s1055_s12, %s1344_s12   ;;  %s985_s11 = sphi %s1053_s11, %s1343_s11  }
   0x7   : > { %s1078_s16 = sadd.s32 1, %s997_s14   ;;  %s225_s17 = sadd.s32 1, %s993_s13 }
   0x8   : > { %s222_s18 = ssub.s32 %s997_s14, %s1078_s16  ;;  %p235_p0 = scmp.ne.s32.totalorder %s993_s13, %s989_s12 }
   0x9   : > { %p223_p1 = scmp.eq.s32.totalorder %s222_s18, 0  ;;  %p236_p2 = scmp.eq.s32.totalorder %s1074_s8, 1 }
   0xa   : > { %p241_p3 = scmp.ne.s32.totalorder %s989_s12, %s985_s11  ;;  %p242_p4 = scmp.eq.s32.totalorder %s831_s15, 1 }
   0xb   : > { %s1089_s19 = scalar_select %p223_p1, %s993_s13, %s225_s17  }
   0xc   : > { %p1091_p5 = por %p236_p2, %p235_p0  ;;  %p1095_p6 = por %p242_p4, %p241_p3 }
   0xd   : > { %p834_p7 = scmp.ge.s32.totalorder %s997_s14, 1  ;;  %p293_p8 = scmp.lt.s32.totalorder %s997_s14, 3 }
   0xf   : > { %p294_p9 = pnand %p834_p7, %p293_p8 }
  0x10   : > { %s835_s22 = sshll.u32 (!%p294_p9), %s1074_s8, 4  ;;  %s326_s15 = sand.u32 (!%p294_p9), 1, %s989_s12  }
  0x11   : > { %297 = sbr.rel (%p294_p9) target bundleno = 777 (0x309), region = 56  ;;  %p329_p10 = scmp.lt.s32.totalorder (!%p294_p9), %s835_s22, 31 }
  0x12   : > { %s764_s27 = scalar_lea.sflag (!%p294_p9), [#allocation4], %s326_s15  ;;  %s955_s30 = scalar_lea.hbm (!%p294_p9), %s1340_s9, 2 }
  0x16   : > { %s1348_s22 = smov (!%p329_p10, %s835_s22), 31  ;;  %vm406_vm0 = vcmask 261120   ;;  %v365_v8 = vld [vmem:[%s1333_s2 + $0x38] sm:$0xff]  ;;  %v999_v10 = vmov 0   ;;  %v363_v11 = vld [vmem:[%s1333_s2 + $0x28] sm:$0xff]  ;;  %v364_v13 = vld [vmem:[%s1333_s2 + $0x30] sm:$0xff] }
  0x17   : > { %s836_s23 = sshll.u32 %s1348_s22, 3  ;;  %932 = vset.pattern.permute.xlu0 %v999_v10  ;;  %933 = vset.pattern.permute.xlu1 %v999_v10  ;;  %v362_v15 = vld [vmem:[%s1333_s2 + $0x20] sm:$0xff]  ;;  %v359_v17 = vld [vmem:[%s1333_s2 + $0x8] sm:$0xff]  ;;  %v542_v21 = vld [vmem:[%s1335_s4 + $0x30] sm:$0xff]  ;;  %vm584_vm1 = vcmask 523264   ;;  %s772_s22 = scalar_lea.hbm %s1340_s9, %s1074_s8 }
  0x18   : > { %s1105_s26 = scalar_lea.vmem %s1331_s0, %s836_s23  ;;  %403 = vperm.xlu0 %932, %v365_v8   ;;  %934 = vset.pattern.permute.xlu2 %v999_v10  ;;  %v358_v19 = vld [vmem:[%s1333_s2] sm:$0xff]  ;;  %v541_v23 = vld [vmem:[%s1335_s4 + $0x28] sm:$0xff]  ;;  %v361_v25 = vld [vmem:[%s1333_s2 + $0x18] sm:$0xff]  ;;  %s327_s23 = scalar_lea.vmem [#allocation3], %s326_s15 }
  0x19   : > { %v357_v1 = vld [vmem:[%s1105_s26 + $0x78] sm:$0xff]  ;;  %v356_v2 = vld [vmem:[%s1105_s26 + $0x70] sm:$0xff]  ;;  %v355_v3 = vld [vmem:[%s1105_s26 + $0x68] sm:$0xff]  ;;  %393 = vperm.xlu1 %933, %v363_v11   ;;  %383 = vperm.xlu2 %934, %v361_v25   ;;  %s774_s24 = sshll.u32 %s327_s23, 4  ;;  %s776_s25 = sshll.u32 %s772_s22, 4  ;;  %s775_s24 = int_to_ptr.vmem [resolvable:$true] %s774_s24  ;;  %s777_s25 = int_to_ptr.hbm [resolvable:$true] %s776_s25 }
  0x1a   : > { %876 = vmatpush.xpose.msk.msra.mxu3 %vm406_vm0, %v357_v1  ;;  %837 = vmatpush.xpose.msk.msra.mxu0 %vm406_vm0, %v357_v1  ;;  %v354_v4 = vld [vmem:[%s1105_s26 + $0x60] sm:$0xff]  ;;  %v353_v5 = vld [vmem:[%s1105_s26 + $0x58] sm:$0xff]  ;;  %v352_v6 = vld [vmem:[%s1105_s26 + $0x50] sm:$0xff]  ;;  %s949_s28 = sshra.s32 %s777_s25, 4  ;;  %s950_s28 = int_to_ptr.hbm [resolvable:$true] %s949_s28 }
  0x1b   : > { %v351_v7 = vld [vmem:[%s1105_s26 + $0x48] sm:$0xff]  ;;  %v350_v9 = vld [vmem:[%s1105_s26 + $0x40] sm:$0xff]  ;;  %v349_v12 = vld [vmem:[%s1105_s26 + $0x38] sm:$0xff]  ;;  %p956_p0 = scmp.lt.s32.totalorder %s950_s28, %s1340_s9 }
  0x1c   : > { %v348_v14 = vld [vmem:[%s1105_s26 + $0x30] sm:$0xff]  ;;  %v347_v16 = vld [vmem:[%s1105_s26 + $0x28] sm:$0xff]  ;;  %v346_v18 = vld [vmem:[%s1105_s26 + $0x20] sm:$0xff] }
  0x1d   : > { %v345_v20 = vld [vmem:[%s1105_s26 + $0x18] sm:$0xff]  ;;  %v344_v22 = vld [vmem:[%s1105_s26 + $0x10] sm:$0xff]  ;;  %v343_v24 = vld [vmem:[%s1105_s26 + $0x8] sm:$0xff] }
  0x1e   : > { %877 = vmatpush.xpose.msk.msra.mxu3 %vm406_vm0, %v356_v2  ;;  %838 = vmatpush.xpose.msk.msra.mxu0 %vm406_vm0, %v356_v2  ;;  %v539_v26 = vld [vmem:[%s1335_s4 + $0x18] sm:$0xff]  ;;  %v342_v27 = vld [vmem:[%s1105_s26] sm:$0xff]  ;;  %v538_v28 = vld [vmem:[%s1335_s4 + $0x10] sm:$0xff]  ;;  %s951_s26 = scalar_lea.hbm %s950_s28, 1 }
  0x1f   : > { %v337_v29 = vld [vmem:[%s1332_s1 + $0x18] sm:$0xff]  ;;  %v334_v30 = vld [vmem:[%s1332_s1] sm:$0xff]  ;;  %v360_v31 = vld [vmem:[%s1333_s2 + $0x10] sm:$0xff]  ;;  %p952_p11 = scmp.ne.s32.totalorder %s950_s28, %s951_s26  ;;  %p957_p1 = scmp.lt.s32.totalorder %s955_s30, %s951_s26 }
  0x20   : > { %398 = vperm.xlu0 %932, %v364_v13   ;;  %v536_v32 = vld [vmem:[%s1335_s4] sm:$0xff]  ;;  %v665_v33 = vld [vmem:[%s1337_s6 + $0x18] sm:$0xff]  ;;  %v335_v35 = vld [vmem:[%s1332_s1 + $0x8] sm:$0xff] }
  0x21   : > { %388 = vperm.xlu1 %933, %v362_v15   ;;  %378 = vperm.xlu2 %934, %v360_v31   ;;  %v338_v34 = vld [vmem:[%s1332_s1 + $0x20] sm:$0xff]  ;;  %v543_v36 = vld [vmem:[%s1335_s4 + $0x38] sm:$0xff]  ;;  %v663_v37 = vld [vmem:[%s1337_s6 + $0x8] sm:$0xff]  ;;  %p953_p12 = pnand %p952_p11, %p1091_p5  ;;  %p958_p2 = por %p957_p1, %p956_p0 }
  0x22   : > { %878 = vmatpush.xpose.msk.msra.mxu3 %vm406_vm0, %v355_v3  ;;  %839 = vmatpush.xpose.msk.msra.mxu0 %vm406_vm0, %v355_v3  ;;  %v662_v38 = vld [vmem:[%s1337_s6] sm:$0xff]  ;;  %v339_v39 = vld [vmem:[%s1332_s1 + $0x28] sm:$0xff]  ;;  %v336_v40 = vld [vmem:[%s1332_s1 + $0x10] sm:$0xff] }
  0x23   : > { %v540_v41 = vld [vmem:[%s1335_s4 + $0x20] sm:$0xff]  ;;  %v340_v42 = vld [vmem:[%s1332_s1 + $0x30] sm:$0xff]  ;;  %v537_v43 = vld [vmem:[%s1335_s4 + $0x8] sm:$0xff]  ;;  %p954_p13 = pneg %p953_p12 }
  0x24   : > { %v341_v44 = vld [vmem:[%s1332_s1 + $0x38] sm:$0xff]  ;;  %v664_v45 = vld [vmem:[%s1337_s6 + $0x10] sm:$0xff]  ;;  %v732_v46 = vld [vmem:[#allocation2] sm:$0x1] }
  0x25   : > { %v528_v15 = vld [vmem:[%s1334_s3] sm:$0xff]  ;;  %p959_p3 = pnand %p958_p2, %p954_p13 }
  0x26   : > { %879 = vmatpush.xpose.msk.msra.mxu3 %vm406_vm0, %v354_v4  ;;  %840 = vmatpush.xpose.msk.msra.mxu0 %vm406_vm0, %v354_v4 }
  0x28   : > { %373 = vperm.xlu0 %932, %v359_v17   ;;  %v530_v17 = vld [vmem:[%s1334_s3 + $0x10] sm:$0xff] }
  0x29   : > { %368 = vperm.xlu1 %933, %v358_v19   ;;  %581 = vperm.xlu2 %934, %v543_v36   ;;  %v532_v19 = vld [vmem:[%s1334_s3 + $0x20] sm:$0xff] }
  0x2a   : > { %880 = vmatpush.xpose.msk.msra.mxu3 %vm406_vm0, %v353_v5  ;;  %841 = vmatpush.xpose.msk.msra.mxu0 %vm406_vm0, %v353_v5 }
  0x2e   : > { %881 = vmatpush.xpose.msk.msra.mxu3 %vm406_vm0, %v352_v6  ;;  %842 = vmatpush.xpose.msk.msra.mxu0 %vm406_vm0, %v352_v6 }
  0x30   : > { %576 = vperm.xlu0 %932, %v542_v21   ;;  %v534_v21 = vld [vmem:[%s1334_s3 + $0x30] sm:$0xff] }
  0x31   : > { %571 = vperm.xlu1 %933, %v541_v23   ;;  %566 = vperm.xlu2 %934, %v540_v41  }
  0x32   : > { %882 = vmatpush.xpose.msk.msra.mxu3 %vm406_vm0, %v351_v7  ;;  %843 = vmatpush.xpose.msk.msra.mxu0 %vm406_vm0, %v351_v7 }
  0x36   : > { %883 = vmatpush.xpose.msk.msra.mxu3 %vm406_vm0, %v350_v9  ;;  %844 = vmatpush.xpose.msk.msra.mxu0 %vm406_vm0, %v350_v9 }
  0x38   : > { %561 = vperm.xlu0 %932, %v539_v26  }
  0x39   : > { %556 = vperm.xlu1 %933, %v538_v28   ;;  %551 = vperm.xlu2 %934, %v537_v43  }
  0x3a   : > { %884 = vmatpush.xpose.msk.msra.mxu3 %vm406_vm0, %v349_v12  ;;  %845 = vmatpush.xpose.msk.msra.mxu0 %vm406_vm0, %v349_v12 }
  0x3e   : > { %885 = vmatpush.xpose.msk.msra.mxu3 %vm406_vm0, %v348_v14  ;;  %846 = vmatpush.xpose.msk.msra.mxu0 %vm406_vm0, %v348_v14 }
  0x40   : > { %546 = vperm.xlu0 %932, %v536_v32  }
  0x41   : > { %683 = vperm.xlu1 %933, %v665_v33   ;;  %678 = vperm.xlu2 %934, %v664_v45  }
  0x42   : > { %886 = vmatpush.xpose.msk.msra.mxu3 %vm406_vm0, %v347_v16  ;;  %847 = vmatpush.xpose.msk.msra.mxu0 %vm406_vm0, %v347_v16  ;;  %v529_v16 = vld [vmem:[%s1334_s3 + $0x8] sm:$0xff] }
  0x46   : > { %887 = vmatpush.xpose.msk.msra.mxu3 %vm406_vm0, %v346_v18  ;;  %848 = vmatpush.xpose.msk.msra.mxu0 %vm406_vm0, %v346_v18  ;;  %v531_v18 = vld [vmem:[%s1334_s3 + $0x18] sm:$0xff] }
  0x48   : > { %673 = vperm.xlu0 %932, %v663_v37  }
  0x49   : > { %668 = vperm.xlu1 %933, %v662_v38   ;;  %735 = vperm.xlu2 %934, %v732_v46  }
  0x4a   : > { %888 = vmatpush.xpose.msk.msra.mxu3 %vm406_vm0, %v345_v20  ;;  %849 = vmatpush.xpose.msk.msra.mxu0 %vm406_vm0, %v345_v20  ;;  %v533_v20 = vld [vmem:[%s1334_s3 + $0x28] sm:$0xff] }
  0x4e   : > { %889 = vmatpush.xpose.msk.msra.mxu3 %vm406_vm0, %v344_v22  ;;  %850 = vmatpush.xpose.msk.msra.mxu0 %vm406_vm0, %v344_v22  ;;  %v535_v22 = vld [vmem:[%s1334_s3 + $0x38] sm:$0xff] }
  0x52   : > { %890 = vmatpush.xpose.msk.msra.mxu3 %vm406_vm0, %v343_v24  ;;  %851 = vmatpush.xpose.msk.msra.mxu0 %vm406_vm0, %v343_v24 }
  0x56   : > { %891 = vmatpush.xpose.msk.msra.mxu3 %vm406_vm0, %v342_v27  ;;  %852 = vmatpush.xpose.msk.msra.mxu0 %vm406_vm0, %v342_v27 }
  0x59   : > { %856 = vmatmul.msk.f32.vlgmr.msra.gmra.mxu3 %vm406_vm0, %v337_v29  ;;  %853 = vmatmul.msk.f32.vlgmr.msra.gmra.mxu0 %vm406_vm0, %v334_v30 }
  0x61   : > { %857 = vmatmul.msk.f32.gmra.mxu3 %vm406_vm0, %v338_v34  ;;  %854 = vmatmul.msk.f32.gmra.mxu0 %vm406_vm0, %v335_v35 }
  0x69   : > { %858 = vmatmul.msk.f32.gmra.mxu3 %vm406_vm0, %v339_v39  ;;  %855 = vmatmul.msk.f32.gmra.mxu0 %vm406_vm0, %v336_v40 }
  0x71   : > { %859 = vmatmul.msk.f32.gmra.mxu3 %vm406_vm0, %v340_v42 }
  0x73   : > { %v384_v55 = vpop.permute.xlu2 %383 }
  0x79   : > { %860 = vmatmul.msk.f32.gmra.mxu3 %vm406_vm0, %v341_v44 }
  0x7b   : > { %v379_v4 = vpop.permute.xlu2 %378 }
  0x83   : > { %v582_v29 = vpop.permute.xlu2 %581 }
  0x8a   : > { %v404_v51 = vpop.permute.xlu0 %403 }
  0x8b   : > { %v394_v52 = vpop.permute.xlu1 %393  ;;  %v567_v33 = vpop.permute.xlu2 %566 }
  0x92   : > { %v399_v56 = vpop.permute.xlu0 %398 }
  0x93   : > { %v389_v60 = vpop.permute.xlu1 %388 }
  0x9a   : > { %v374_v7 = vpop.permute.xlu0 %373 }
  0x9b   : > { %v369_v10 = vpop.permute.xlu1 %368 }
  0xa2   : > { %v577_v30 = vpop.permute.xlu0 %576 }
  0xa3   : > { %v572_v32 = vpop.permute.xlu1 %571 }
  0xaa   : > { %v562_v37 = vpop.permute.xlu0 %561 }
  0xab   : > { %v557_v44 = vpop.permute.xlu1 %556 }
  0xd6   : > { %v496_v50 = vpop.f32.mrf.mxu0 }
  0xd7   : > { %v497_v11 = vadd.f32 %v496_v50, %v369_v10  ;;  %v547_v50 = vpop.permute.xlu0 %546 }
  0xd9   : > { %v520_v14 = vmax.f32 %v497_v11, 0.0  ;;  %v731_v11 = vld [vmem:[%s1338_s7] sm:$0x1] }
  0xdc   : > { %v505_v47 = vpop.f32.mrf.mxu3 }
  0xdd   : > { %v506_v2 = vadd.f32 %v505_v47, %v384_v55  ;;  %v552_v47 = vpop.permute.xlu2 %551  ;;  %v658_v55 = vld [vmem:[%s1336_s5] sm:$0xff] }
  0xde   : > { %v499_v54 = vpop.f32.mrf.mxu0 }
  0xdf   : > { %v523_v8 = vmax.f32 %v506_v2, 0.0  ;;  %v500_v9 = vadd.f32 %v499_v54, %v374_v7 }
  0xe1   : > { %v521_v13 = vmax.f32 %v500_v9, 0.0 }
  0xe4   : > { %v508_v48 = vpop.f32.mrf.mxu3 }
  0xe5   : > { %v509_v63 = vadd.f32 %v508_v48, %v389_v60 }
  0xe6   : > { %v502_v1 = vpop.f32.mrf.mxu0 }
  0xe7   : > { %v524_v5 = vmax.f32 %v509_v63, 0.0  ;;  %v503_v6 = vadd.f32 %v502_v1, %v379_v4  ;;  %v679_v63 = vpop.permute.xlu2 %678 }
  0xe9   : > { %v522_v12 = vmax.f32 %v503_v6, 0.0 }
  0xec   : > { %v511_v49 = vpop.f32.mrf.mxu3 }
  0xed   : > { %v512_v61 = vadd.f32 %v511_v49, %v394_v52 }
  0xef   : > { %v525_v3 = vmax.f32 %v512_v61, 0.0 }
  0xf4   : > { %v514_v53 = vpop.f32.mrf.mxu3 }
  0xf5   : > { %v515_v58 = vadd.f32 %v514_v53, %v399_v56  ;;  %v659_v56 = vld [vmem:[%s1336_s5 + $0x8] sm:$0xff] }
  0xf7   : > { %v526_v0 = vmax.f32 %v515_v58, 0.0  ;;  %v661_v58 = vld [vmem:[%s1336_s5 + $0x18] sm:$0xff] }
  0xfc   : > { %v517_v57 = vpop.f32.mrf.mxu3 }
  0xfd   : > { %v518_v59 = vadd.f32 %v517_v57, %v404_v51  ;;  %v660_v57 = vld [vmem:[%s1336_s5 + $0x10] sm:$0xff] }
  0xff   : > { %v527_v62 = vmax.f32 %v518_v59, 0.0 }
 0x101   : > { %617 = vmatpush.msra.mxu1 %v527_v62  ;;  %v684_v62 = vpop.permute.xlu1 %683 }
 0x103   : > { %618 = vmatpush.msra.mxu1 %v526_v0 }
 0x105   : > { %619 = vmatpush.msra.mxu1 %v525_v3  ;;  %v674_v3 = vpop.permute.xlu0 %673 }
 0x107   : > { %620 = vmatpush.msra.mxu1 %v524_v5 }
 0x109   : > { %621 = vmatpush.msra.mxu1 %v523_v8  ;;  %v669_v6 = vpop.permute.xlu1 %668 }
 0x10b   : > { %622 = vmatpush.msra.mxu1 %v522_v12  ;;  %v736_v12 = vpop.permute.xlu2 %735 }
 0x10d   : > { %623 = vmatpush.msra.mxu1 %v521_v13  ;;  %v738_v13 = vperm.slane %v736_v12, 0 }
 0x10f   : > { %624 = vmatpush.msra.mxu1 %v520_v14 }
 0x110   : > { %861 = vmatmul.msk.f32.vlgmr.msra.gmra.mxu1 %vm584_vm1, %v528_v15 }
 0x118   : > { %862 = vmatmul.msk.f32.gmra.mxu1 %vm584_vm1, %v529_v16 }
 0x120   : > { %863 = vmatmul.msk.f32.gmra.mxu1 %vm584_vm1, %v530_v17 }
 0x128   : > { %864 = vmatmul.msk.f32.gmra.mxu1 %vm584_vm1, %v531_v18 }
 0x130   : > { %865 = vmatmul.msk.f32.gmra.mxu1 %vm584_vm1, %v532_v19 }
 0x138   : > { %866 = vmatmul.msk.f32.gmra.mxu1 %vm584_vm1, %v533_v20 }
 0x140   : > { %867 = vmatmul.msk.f32.gmra.mxu1 %vm584_vm1, %v534_v21 }
 0x148   : > { %868 = vmatmul.msk.f32.gmra.mxu1 %vm584_vm1, %v535_v22 }
 0x18d   : > { %v626_v23 = vpop.f32.mrf.mxu1 }
 0x18e   : > { %v627_v51 = vadd.f32 %v626_v23, %v547_v50 }
 0x190   : > { %v650_v54 = vmax.f32 %v627_v51, 0.0 }
 0x195   : > { %v629_v24 = vpop.f32.mrf.mxu1 }
 0x196   : > { %v630_v48 = vadd.f32 %v629_v24, %v552_v47 }
 0x198   : > { %v651_v53 = vmax.f32 %v630_v48, 0.0 }
 0x19d   : > { %v632_v25 = vpop.f32.mrf.mxu1 }
 0x19e   : > { %v633_v45 = vadd.f32 %v632_v25, %v557_v44 }
 0x1a0   : > { %v652_v52 = vmax.f32 %v633_v45, 0.0 }
 0x1a5   : > { %v635_v26 = vpop.f32.mrf.mxu1 }
 0x1a6   : > { %v636_v42 = vadd.f32 %v635_v26, %v562_v37 }
 0x1a8   : > { %v653_v49 = vmax.f32 %v636_v42, 0.0 }
 0x1ad   : > { %v638_v27 = vpop.f32.mrf.mxu1 }
 0x1ae   : > { %v639_v40 = vadd.f32 %v638_v27, %v567_v33 }
 0x1b0   : > { %v654_v46 = vmax.f32 %v639_v40, 0.0 }
 0x1b5   : > { %v641_v28 = vpop.f32.mrf.mxu1 }
 0x1b6   : > { %v642_v38 = vadd.f32 %v641_v28, %v572_v32 }
 0x1b8   : > { %v655_v43 = vmax.f32 %v642_v38, 0.0 }
 0x1bd   : > { %v644_v31 = vpop.f32.mrf.mxu1 }
 0x1be   : > { %v645_v35 = vadd.f32 %v644_v31, %v577_v30 }
 0x1c0   : > { %v656_v41 = vmax.f32 %v645_v35, 0.0 }
 0x1c5   : > { %v647_v34 = vpop.f32.mrf.mxu1 }
 0x1c6   : > { %v648_v36 = vadd.f32 %v647_v34, %v582_v29 }
 0x1c8   : > { %v657_v39 = vmax.f32 %v648_v36, 0.0 }
 0x1ca   : > { %706 = vmatpush.msra.mxu2 %v657_v39 }
 0x1cc   : > { %707 = vmatpush.msra.mxu2 %v656_v41 }
 0x1ce   : > { %708 = vmatpush.msra.mxu2 %v655_v43 }
 0x1d0   : > { %709 = vmatpush.msra.mxu2 %v654_v46 }
 0x1d2   : > { %710 = vmatpush.msra.mxu2 %v653_v49 }
 0x1d4   : > { %711 = vmatpush.msra.mxu2 %v652_v52 }
 0x1d6   : > { %712 = vmatpush.msra.mxu2 %v651_v53 }
 0x1d8   : > { %713 = vmatpush.msra.mxu2 %v650_v54 }
 0x1d9   : > { %869 = vmatmul.msk.f32.vlgmr.msra.gmra.mxu2 %vm584_vm1, %v658_v55 }
 0x1e1   : > { %870 = vmatmul.msk.f32.gmra.mxu2 %vm584_vm1, %v659_v56 }
 0x1e9   : > { %871 = vmatmul.msk.f32.gmra.mxu2 %vm584_vm1, %v660_v57 }
 0x1f1   : > { %872 = vmatmul.msk.f32.gmra.mxu2 %vm584_vm1, %v661_v58 }
 0x25c   : > { %v715_v59 = vpop.f32.mrf.mxu2 }
 0x25d   : > { %v716_v7 = vadd.f32 %v715_v59, %v669_v6 }
 0x25f   : > { %v727_v10 = vmax.f32 %v716_v7, 0.0 }
 0x264   : > { %v718_v60 = vpop.f32.mrf.mxu2 }
 0x265   : > { %v719_v4 = vadd.f32 %v718_v60, %v674_v3 }
 0x267   : > { %v728_v9 = vmax.f32 %v719_v4, 0.0 }
 0x26c   : > { %v721_v61 = vpop.f32.mrf.mxu2 }
 0x26d   : > { %v722_v1 = vadd.f32 %v721_v61, %v679_v63 }
 0x26f   : > { %v729_v8 = vmax.f32 %v722_v1, 0.0 }
 0x274   : > { %v724_v0 = vpop.f32.mrf.mxu2 }
 0x275   : > { %v725_v2 = vadd.f32 %v724_v0, %v684_v62 }
 0x277   : > { %v730_v5 = vmax.f32 %v725_v2, 0.0 }
 0x279   : > { %754 = vmatpush.msrb.mxu2 %v730_v5 }
 0x27b   : > { %755 = vmatpush.msrb.mxu2 %v729_v8 }
 0x27d   : > { %756 = vmatpush.msrb.mxu2 %v728_v9 }
 0x27f   : > { %757 = vmatpush.msrb.mxu2 %v727_v10 }
 0x280   : > { %873 = vmatmul.msk.f32.vlgmr.msrb.gmra.mxu2 %vm406_vm0, %v731_v11 }
 0x303   : > { %v759_v14 = vpop.f32.mrf.mxu2 }
 0x304   : > { %v760_v15 = vadd.f32 %v759_v14, %v738_v13 }
 0x306   : > { %762 = vst [vmem:[%s327_s23] sm:$0x1] %v760_v15 }
 0x307   : > { %962 = shalt.err (!%p959_p3)
}
 0x308   : > { %892 = dma.vmem_to_hbm [thread:$0]  (%p1091_p5), %s775_s24, 16, %s777_s25, %s764_s27  }
 0x309 PF: > { %p898_p4 = scmp.ge.s32.totalorder %s997_s14, 2  ;;  %s788_s15 = sand.u32 1, %s985_s11  }
 0x30a   : > { %s789_s18 = scalar_lea.sflag [#allocation4], %s788_s15 }
 0x30b   : > { %p895_p7 = pnand %p898_p4, %p1095_p6 }
 0x30d   : > { %p896_p8 = pneg %p895_p7 }
 0x30f   : > { %980 = dma.done.wait (%p896_p8), %s789_s18, 16  }
 0x310   : > { %982 = vsyncadd (%p896_p8), %s789_s18, 4294967280  ;;  %p21_p9 = scmp.ge.s32.totalorder %s1078_s16, 4   ;;  %s1343_s11 = smov %s989_s12 }
 0x311   : > { %s1344_s12 = smov %s993_s13  ;;  %s1345_s13 = smov %s1089_s19 }
 0x312   : > { %s1346_s14 = smov %s1078_s16  ;;  %23 = sbr.rel (!%p21_p9) target bundleno = 6 (0x6), region = 91 }
 0x317   :  { %794 = vsyncpa [#allocation4], 1 }
 0x318   :  { %796 = vsyncpa [#allocation4 + $0x1], 1 }

</bundles_post_ra>
